<compile_context>
chip_gen: v5e
topology: v5e:2x2
jax: 0.10.0
libtpu: 0.0.40
codegen_flags: <defaults>
</compile_context>

<pallas_src>
import functools

import jax
import jax.numpy as jnp
from jax.experimental import pallas as pl
from jax.experimental.pallas import tpu as pltpu

_LANE = 128
_SUB = 8
_VMEM_LIMIT = 32 * 1024 * 1024          # passed to the compiler
_VMEM_BUDGET = 24 * 1024 * 1024         # tile-selection budget (headroom vs limit)


def _linear_lrelu_kernel(x_ref, w_ref, b_ref, o_ref):
    # x_ref: (TB, N_in), w_ref: (N_in, TN) [already (in, out)], b_ref: (1, TN)
    y = jnp.dot(x_ref[...], w_ref[...], preferred_element_type=jnp.float32)
    y = y + b_ref[...]                               # broadcast bias over batch
    # leaky_relu(negative_slope=0.01) as a single VPU select
    o_ref[...] = jnp.where(y > 0, y, 0.01 * y).astype(o_ref.dtype)


def _choose_tiles(B, N_in, n_out_p, dtype_bytes=4):
    """Pick (batch tile, N_out tile) that fit the VMEM budget."""
    # Output-feature tile: lane multiple, <= 512 (keeps the resident weight
    # block small on v7x's 64 MiB VMEM and feeds both TensorCores).
    tn = min(n_out_p, 4 * _LANE)
    # Batch tile: sublane-aligned, up to 256 rows (v6e roofline sweet spot).
    tb = min(256, pl.cdiv(B, _SUB) * _SUB)

    def vmem_bytes(tb_, tn_):
        # 2x for double buffering of each pipelined block.
        return 2 * dtype_bytes * (tb_ * N_in + N_in * tn_ + tn_ + tb_ * tn_)

    while vmem_bytes(tb, tn) > _VMEM_BUDGET and tn > _LANE:
        tn //= 2
    while vmem_bytes(tb, tn) > _VMEM_BUDGET and tb > _SUB:
        tb = max(_SUB, tb // 2)
    return tb, tn


def make_neuralnet_forward(weights, bias):
    """Mirror NeuralNet.__init__: prepare parameters ONCE, return a jitted forward.

    weights: (N, N) float32 raw weights (abs() applied here, as in the module)
    bias:    (N,)   float32
    Returned fn maps x: (B, N) -> (B, N) float32.
    """
    N_out, N_in = weights.shape
    assert N_out == N_in, "module builds a square Linear (N -> N)"
    assert bias.shape == (N_out,)

    n_out_p = pl.cdiv(N_out, _LANE) * _LANE

    # Hoisted out of the hot path: abs (module init), transpose to (in, out),
    # pad ONLY the output-feature dim to a lane multiple (unmasked vst).
    w_abs = jnp.abs(weights)
    w_t = jnp.pad(w_abs.T, ((0, 0), (0, n_out_p - N_out)))          # (N_in, n_out_p)
    b_p = jnp.pad(bias, (0, n_out_p - N_out)).reshape(1, n_out_p)   # (1, n_out_p)

    @functools.partial(jax.jit)
    def forward(x):
        B = x.shape[0]
        assert x.shape == (B, N_in)

        tb, tn = _choose_tiles(B, N_in, n_out_p)
        b_pad = pl.cdiv(B, tb) * tb

        # Only the batch dim may need padding; single jnp.pad, skipped if aligned.
        x_p = x if b_pad == B else jnp.pad(x, ((0, b_pad - B), (0, 0)))

        grid = (b_pad // tb, n_out_p // tn)

        # Cost estimate from true (unpadded) shapes.
        flops = 2 * B * N_in * N_out
        bytes_accessed = 4 * (B * N_in + N_in * N_out + N_out + B * N_out)

        out_p = pl.pallas_call(
            _linear_lrelu_kernel,
            out_shape=jax.ShapeDtypeStruct((b_pad, n_out_p), x.dtype),
            grid=grid,
            in_specs=[
                pl.BlockSpec((tb, N_in), lambda i, j: (i, 0)),   # x: batch-tiled, full K
                pl.BlockSpec((N_in, tn), lambda i, j: (0, j)),   # W^T: N_out-tiled, full K
                pl.BlockSpec((1, tn), lambda i, j: (0, j)),      # bias: N_out-tiled
            ],
            out_specs=pl.BlockSpec((tb, tn), lambda i, j: (i, j)),
            compiler_params=pltpu.CompilerParams(
                dimension_semantics=("parallel", "parallel"),
                vmem_limit_bytes=_VMEM_LIMIT,
            ),
            cost_estimate=pl.CostEstimate(
                flops=flops, transcendentals=0, bytes_accessed=bytes_accessed),
        )(x_p, w_t, b_p)

        # Slice only what was actually padded (avoid an extra HBM copy otherwise).
        if b_pad == B and n_out_p == N_out:
            return out_p
        return out_p[:B, :N_out]

    return forward


def reference_forward(x, weights, bias):
    y = x @ jnp.abs(weights).T + bias
    return jnp.where(y > 0, y, 0.01 * y)


if __name__ == "__main__":
    key = jax.random.PRNGKey(0)
    k_w, k_b, k_x = jax.random.split(key, 3)

    N = 32   # weights.shape[0] -> square Linear (N -> N)
    B = 8    # batch

    # Raw weights; the module (and our factory) applies abs() at init.
    weights = jax.random.normal(k_w, (N, N), dtype=jnp.float32)
    # PyTorch Linear default bias: uniform(-1/sqrt(N), 1/sqrt(N)), deterministic here.
    bound = 1.0 / jnp.sqrt(jnp.float32(N))
    bias = jax.random.uniform(k_b, (N,), dtype=jnp.float32,
                              minval=-bound, maxval=bound)

    x = jax.random.normal(k_x, (B, N), dtype=jnp.float32)

    fwd = make_neuralnet_forward(weights, bias)   # one-time param prep
    out = jax.block_until_ready(fwd(x))

    ref = reference_forward(x, weights, bias)
    assert out.shape == (B, N)
    assert jnp.allclose(out, ref, atol=1e-5, rtol=1e-5), "mismatch vs reference"

    print("KERNEL_OK")
</pallas_src>

<mosaic_0001>
module attributes {stable_mosaic.version = 11 : i64} {
  func.func @_linear_lrelu_kernel(%arg0: i32, %arg1: i32, %arg2: memref<8x32xf32, #tpu.memory_space<vmem>>, %arg3: memref<32x128xf32, #tpu.memory_space<vmem>>, %arg4: memref<1x128xf32, #tpu.memory_space<vmem>>, %arg5: memref<8x128xf32, #tpu.memory_space<vmem>>) attributes {dimension_semantics = [#tpu.dimension_semantics<parallel>, #tpu.dimension_semantics<parallel>], iteration_bounds = array<i64: 1, 1>, scalar_prefetch = 0 : i64, scratch_operands = 0 : i64, tpu.core_type = #tpu.core_type<tc>, window_params = [{transform_indices = @transform_0, window_bounds = array<i64: 8, 32>}, {transform_indices = @transform_1, window_bounds = array<i64: 32, 128>}, {transform_indices = @transform_2, window_bounds = array<i64: 1, 128>}, {transform_indices = @transform_3, window_bounds = array<i64: 8, 128>}]} {
    %c0 = arith.constant 0 : index
    %c0_0 = arith.constant 0 : index
    %0 = vector.load %arg2[%c0, %c0_0] : memref<8x32xf32, #tpu.memory_space<vmem>>, vector<8x32xf32>
    %c0_1 = arith.constant 0 : index
    %c0_2 = arith.constant 0 : index
    %1 = vector.load %arg3[%c0_1, %c0_2] : memref<32x128xf32, #tpu.memory_space<vmem>>, vector<32x128xf32>
    %cst = arith.constant dense<0.000000e+00> : vector<8x128xf32>
    %2 = tpu.matmul %0, %1, %cst {dimension_numbers = #tpu.dot_dimension_numbers<[1], [0], [0], [1], [0, 0, 1, 1], [], []>} : vector<8x32xf32>, vector<32x128xf32>, vector<8x128xf32> -> vector<8x128xf32>
    %c0_3 = arith.constant 0 : index
    %c0_4 = arith.constant 0 : index
    %3 = vector.load %arg4[%c0_3, %c0_4] : memref<1x128xf32, #tpu.memory_space<vmem>>, vector<1x128xf32>
    %4 = vector.broadcast %3 : vector<1x128xf32> to vector<8x128xf32>
    %5 = arith.addf %2, %4 : vector<8x128xf32>
    %cst_5 = arith.constant 0.000000e+00 : f32
    %6 = vector.broadcast %cst_5 : f32 to vector<8x128xf32>
    %7 = arith.cmpf ogt, %5, %6 : vector<8x128xf32>
    %cst_6 = arith.constant 0.00999999977 : f32
    %8 = vector.broadcast %cst_6 : f32 to vector<8x128xf32>
    %9 = arith.mulf %8, %5 : vector<8x128xf32>
    %10 = arith.select %7, %5, %9 : vector<8x128xi1>, vector<8x128xf32>
    %c0_7 = arith.constant 0 : index
    %c0_8 = arith.constant 0 : index
    %11 = vector.load %arg5[%c0_7, %c0_8] : memref<8x128xf32, #tpu.memory_space<vmem>>, vector<8x128xf32>
    tpu.vector_store %arg5[%c0_7, %c0_8], %10 {strides = array<i32>} : memref<8x128xf32, #tpu.memory_space<vmem>>, vector<8x128xf32>,
    return
  }
  func.func @transform_0(%arg0: i32, %arg1: i32) -> (i32, i32) {
    %c0_i32 = arith.constant 0 : i32
    %c0_i32_0 = arith.constant 0 : i32
    return %arg0, %c0_i32 : i32, i32
  }
  func.func @transform_1(%arg0: i32, %arg1: i32) -> (i32, i32) {
    %c0_i32 = arith.constant 0 : i32
    %c0_i32_0 = arith.constant 0 : i32
    return %c0_i32, %arg1 : i32, i32
  }
  func.func @transform_2(%arg0: i32, %arg1: i32) -> (i32, i32) {
    %c0_i32 = arith.constant 0 : i32
    %c0_i32_0 = arith.constant 0 : i32
    return %c0_i32, %arg1 : i32, i32
  }
  func.func @transform_3(%arg0: i32, %arg1: i32) -> (i32, i32) {
    %c0_i32 = arith.constant 0 : i32
    return %arg0, %arg1 : i32, i32
  }
}

</mosaic_0001>

<bundles_post_ra>
// kernel: forward.1
= control target key start
LH: loop header
LB: loop body
LE: loop exit
PB: predicated region body
PF: predicated region fallthrough
CT: control target
= control target key end

     0   :  { %8 = vsyncpa [#allocation3], 0  ;;  %s222_s0 = inlined_call_operand.hbm [shape: f32[8,32], index: 0, kind: input, shape index: {}]   ;;  %s223_s1 = inlined_call_operand.hbm [shape: f32[32,128], index: 1, kind: input, shape index: {}]   ;;  %s224_s2 = inlined_call_operand.vmem [shape: f32[1,128], index: 2, kind: input, shape index: {}]   ;;  %s225_s3 = inlined_call_operand.hbm [shape: f32[8,128], index: 3, kind: output, shape index: {}]  }
   0x1   :  { %9 = vsyncpa [#allocation6], 0 }
   0x2   :  { %10 = vsyncpa [#allocation4], 0  ;;  %s16_s14 = sshll.u32 %s222_s0, 4  ;;  %s185_s15 = smov [#allocation2]   ;;  %s17_s14 = int_to_ptr.hbm [resolvable:$true] %s16_s14 }
   0x3   :  { %s18_s16 = sshll.u32 %s185_s15, 4  ;;  %s26_s19 = sshll.u32 %s223_s1, 4  ;;  %s19_s16 = int_to_ptr.vmem [resolvable:$true] %s18_s16  ;;  %s27_s19 = int_to_ptr.hbm [resolvable:$true] %s26_s19 }
   0x4   :  { %21 = dma.hbm_to_vmem [thread:$0]  %s17_s14, 128, %s19_s16, [#allocation3]  }
   0x5   :  { %s186_s20 = smov [#allocation5]   ;;  %s187_s22 = smov 128  }
   0x6   :  { %s28_s21 = sshll.u32 %s186_s20, 4  ;;  %s188_s23 = smov 8   ;;  %s29_s21 = int_to_ptr.vmem [resolvable:$true] %s28_s21 }
   0x7   :  { %34 = dma.hbm_to_vmem [thread:$0]  %s27_s19, 512, %s29_s21, [#allocation6], %s187_s22, %s187_s22, %s188_s23  }
   0x8   :  { %179 = dma.done.wait [#allocation3], 128  }
   0x9   :  { %180 = vsyncadd [#allocation3], 4294967168 }
   0xa   :  { %181 = dma.done.wait [#allocation6], 512  }
   0xb   :  { %182 = vsyncadd [#allocation6], 4294966784  ;;  %v49_v0 = vld [vmem:[#allocation5 + $0x18] sm:$0xff]  ;;  %v48_v1 = vld [vmem:[#allocation5 + $0x10] sm:$0xff]  ;;  %vm54_vm0 = vcmask 261120   ;;  %s189_s24 = smov [#allocation7]  }
   0xc   :  { %70 = vmatpush.msra.mxu0 %v49_v0  ;;  %v47_v2 = vld [vmem:[#allocation5 + $0x8] sm:$0xff]  ;;  %v46_v3 = vld [vmem:[#allocation5] sm:$0xff]  ;;  %v45_v4 = vld [vmem:[#allocation2] sm:$0xff]  ;;  %s87_s25 = sshll.u32 %s189_s24, 4  ;;  %s89_s28 = sshll.u32 %s225_s3, 4  ;;  %s88_s25 = int_to_ptr.vmem [resolvable:$true] %s87_s25  ;;  %s90_s28 = int_to_ptr.hbm [resolvable:$true] %s89_s28 }
   0xd   :  { %v106_v5 = vld [vmem:[%s224_s2] ss:$0 sm:$0xff] }
   0xe   :  { %71 = vmatpush.msra.mxu0 %v48_v1 }
  0x10   :  { %72 = vmatpush.msra.mxu0 %v47_v2 }
  0x12   :  { %73 = vmatpush.msra.mxu0 %v46_v3 }
  0x13   :  { %100 = vmatmul.msk.f32.vlgmr.msra.gmra.mxu0 %vm54_vm0, %v45_v4 }
  0x90   :  { %v75_v6 = vpop.f32.mrf.mxu0 }
  0x91   :  { %v76_v7 = vadd.f32 %v106_v5, %v75_v6 }
  0x93   :  { %vm78_vm1 = vcmp.gt.f32.partialorder %v76_v7, 0.0  ;;  %v79_v8 = vmul.f32 0.01, %v76_v7 }
  0x95   :  { %v80_v9 = vsel %vm78_vm1, %v76_v7, %v79_v8 }
  0x96   :  { %81 = vst [vmem:[#allocation7] sm:$0xff] %v80_v9 }
  0x97   :  { %92 = dma.vmem_to_hbm [thread:$0]  %s88_s25, 128, %s90_s28, [#allocation4]  }
  0x98   :  { %183 = dma.done.wait [#allocation4], 128  }
  0x99   :  { %184 = vsyncadd [#allocation4], 4294967168 }
  0x9a   :  { %97 = vsyncpa [#allocation3], 1 }
  0x9b   :  { %98 = vsyncpa [#allocation6], 1 }
  0x9c   :  { %99 = vsyncpa [#allocation4], 1 }

</bundles_post_ra>
